<compile_context>
chip_gen: v7x
topology: tpu7x:2x2x1
jax: 0.10.0
libtpu: 0.0.40
codegen_flags: <defaults>
</compile_context>

<pallas_src>
import jax
import jax.numpy as jnp
from jax.experimental import pallas as pl
from jax.experimental.pallas import tpu as pltpu

BN_EPS = 1e-5
LN_EPS = 1e-5
LEAKY_SLOPE = 0.1


def mlp_kernel(
    x_ref,                       # (d_in, tb)   feature-major input tile
    w1_ref, b1_ref,              # BN(eval) already folded into w1/b1
    w2_ref, b2_ref, ln_g_ref, ln_b_ref,
    w3_ref, b3_ref,
    out_ref,                     # (d_out, tb)
):
    x = x_ref[...]

    # ---- Layer 1: Linear(32 -> 64, bias) [BN folded] + ReLU ----
    h = jnp.dot(w1_ref[...], x, preferred_element_type=jnp.float32)
    h = h + b1_ref[...]                          # (d_h1, 1) broadcasts over lanes
    h = jnp.maximum(h, 0.0)

    # ---- Layer 2: Linear(64 -> 48, bias) + LayerNorm(48) + LeakyReLU(0.1) ----
    h = jnp.dot(w2_ref[...], h.astype(w2_ref.dtype),
                preferred_element_type=jnp.float32)
    h = h + b2_ref[...]
    # Fused single-pass stats over the feature (sublane) axis; per-lane = per-sample.
    mean = jnp.mean(h, axis=0, keepdims=True)            # (1, tb)
    msq = jnp.mean(h * h, axis=0, keepdims=True)         # (1, tb)
    var = msq - mean * mean
    h = (h - mean) * jax.lax.rsqrt(var + LN_EPS)
    h = h * ln_g_ref[...] + ln_b_ref[...]
    h = jnp.where(h > 0.0, h, LEAKY_SLOPE * h)

    # ---- Layer 3: Linear(48 -> 16, bias), no activation ----
    y = jnp.dot(w3_ref[...], h.astype(w3_ref.dtype),
                preferred_element_type=jnp.float32)
    y = y + b3_ref[...]
    out_ref[...] = y.astype(out_ref.dtype)       # (16, tb): full-width lane-dense store


def mlp_forward(x, params, *, block_cols=16384, compute_dtype=jnp.bfloat16,
                out_dtype=None, vmem_limit_bytes=48 * 1024 * 1024):
    """x: (batch, d_in) sample-major. Returns (batch, d_out)."""
    (w1, b1, bn_g, bn_b, bn_m, bn_v,
     w2, b2, ln_g, ln_b,
     w3, b3) = params
    if out_dtype is None:
        out_dtype = x.dtype

    # ---- Fold eval-mode BatchNorm (exactly affine) into the first linear ----
    s = bn_g * jax.lax.rsqrt(bn_v + BN_EPS)      # (d_h1, 1)
    w1f = (w1 * s).astype(compute_dtype)         # per-output-row scale of (out, in)
    b1f = (b1 - bn_m) * s + bn_b                 # stays f32
    w2c = w2.astype(compute_dtype)
    w3c = w3.astype(compute_dtype)

    batch, d_in = x.shape
    d_h1 = w1.shape[0]
    d_h2 = w2.shape[0]
    d_out = w3.shape[0]

    # Feature-major / lane-dense: batch on the 128-lane (last) axis.
    # (Wrapper-side transpose is layout plumbing; callers that already hold a
    #  feature-major activation slab can skip it.)
    xt = x.T.astype(compute_dtype)               # (d_in, batch)

    if batch <= block_cols:
        tb = batch                               # full-extent block is always legal
    else:
        tb = max(128, (min(block_cols, batch) // 128) * 128)
    grid = (pl.cdiv(batch, tb),)

    def cols_spec(nrows):
        # x / out tiles march along the batch (lane) axis with the grid.
        return pl.BlockSpec((nrows, tb), lambda i: (0, i))

    def resident_spec(a):
        # Weights / per-feature columns: constant block index -> stay in VMEM.
        return pl.BlockSpec(a.shape, lambda i: (0, 0))

    args = (xt, w1f, b1f, w2c, b2, ln_g, ln_b, w3c, b3)
    in_specs = [cols_spec(d_in)] + [resident_spec(a) for a in args[1:]]

    flops = 2 * batch * (d_in * d_h1 + d_h1 * d_h2 + d_h2 * d_out)
    bytes_accessed = int(
        xt.size * xt.dtype.itemsize
        + batch * d_out * jnp.dtype(out_dtype).itemsize
        + sum(a.size * a.dtype.itemsize for a in args[1:]))

    yt = pl.pallas_call(
        mlp_kernel,
        out_shape=jax.ShapeDtypeStruct((d_out, batch), out_dtype),
        grid=grid,
        in_specs=in_specs,
        out_specs=cols_spec(d_out),
        compiler_params=pltpu.CompilerParams(
            dimension_semantics=("parallel",),
            vmem_limit_bytes=vmem_limit_bytes),
        cost_estimate=pl.CostEstimate(
            flops=flops, transcendentals=batch, bytes_accessed=bytes_accessed),
    )(*args)
    return yt.T                                   # back to (batch, d_out)


def init_params(key, d_in=32, d_h1=64, d_h2=48, d_out=16):
    ks = jax.random.split(key, 8)

    def linear(kw, kb, fan_in, fan_out):
        # PyTorch Linear init: U(-1/sqrt(fan_in), 1/sqrt(fan_in)); weight kept
        # in PyTorch (out, in) orientation; bias as an (out, 1) column.
        bound = 1.0 / jnp.sqrt(fan_in)
        w = jax.random.uniform(kw, (fan_out, fan_in), jnp.float32, -bound, bound)
        b = jax.random.uniform(kb, (fan_out, 1), jnp.float32, -bound, bound)
        return w, b

    w1, b1 = linear(ks[0], ks[1], d_in, d_h1)
    w2, b2 = linear(ks[2], ks[3], d_h1, d_h2)
    w3, b3 = linear(ks[4], ks[5], d_h2, d_out)

    # BatchNorm1d (eval mode): gamma=1, beta=0, deterministic running stats
    bn_g = jnp.ones((d_h1, 1), jnp.float32)
    bn_b = jnp.zeros((d_h1, 1), jnp.float32)
    bn_m = 0.05 * jax.random.normal(ks[6], (d_h1, 1), jnp.float32)
    bn_v = jnp.abs(1.0 + 0.1 * jax.random.normal(ks[7], (d_h1, 1), jnp.float32))

    # LayerNorm: gamma=1, beta=0
    ln_g = jnp.ones((d_h2, 1), jnp.float32)
    ln_b = jnp.zeros((d_h2, 1), jnp.float32)

    return (w1, b1, bn_g, bn_b, bn_m, bn_v, w2, b2, ln_g, ln_b, w3, b3)


def reference_forward(x, params):
    """Pure-JAX reference replicating the PyTorch forward (eval mode, f32)."""
    (w1, b1, bn_g, bn_b, bn_m, bn_v, w2, b2, ln_g, ln_b, w3, b3) = params
    h = x @ w1.T + b1.T
    h = (h - bn_m.T) / jnp.sqrt(bn_v.T + BN_EPS) * bn_g.T + bn_b.T
    h = jnp.maximum(h, 0.0)
    h = h @ w2.T + b2.T
    mu = jnp.mean(h, -1, keepdims=True)
    var = jnp.mean((h - mu) ** 2, -1, keepdims=True)
    h = (h - mu) / jnp.sqrt(var + LN_EPS) * ln_g.T + ln_b.T
    h = jnp.where(h > 0.0, h, LEAKY_SLOPE * h)
    return h @ w3.T + b3.T


if __name__ == "__main__":
    key = jax.random.PRNGKey(0)
    k_x, k_p = jax.random.split(key)

    batch, d_in, d_out = 256, 32, 16
    x = jax.random.normal(k_x, (batch, d_in), jnp.float32)
    params = init_params(k_p)

    ref = reference_forward(x, params)

    # Exact-math path (f32 streams, f32 output) -- tight correctness check of
    # the fused kernel, BN folding, fused LN stats and the 2-step batch grid.
    out_f32 = jax.block_until_ready(
        mlp_forward(x, params, block_cols=128,
                    compute_dtype=jnp.float32, out_dtype=jnp.float32))
    assert out_f32.shape == (batch, d_out)
    assert jnp.allclose(out_f32, ref, atol=1e-3, rtol=1e-3), "f32 kernel mismatch"

    # Performance path: bf16 x/weights + bf16 output writeback, f32 accumulate
    # and f32 norm/activation math.
    out_bf16 = jax.block_until_ready(
        mlp_forward(x, params, block_cols=128,
                    compute_dtype=jnp.bfloat16, out_dtype=jnp.bfloat16))
    assert out_bf16.shape == (batch, d_out)
    assert jnp.allclose(out_bf16.astype(jnp.float32), ref,
                        atol=1e-1, rtol=5e-2), "bf16 kernel mismatch"

    print("KERNEL_OK")
</pallas_src>

<mosaic_0001>
module attributes {stable_mosaic.version = 11 : i64} {
  func.func @mlp_kernel(%arg0: i32, %arg1: memref<32x128xf32, #tpu.memory_space<vmem>>, %arg2: memref<64x32xf32, #tpu.memory_space<vmem>>, %arg3: memref<64x1xf32, #tpu.memory_space<vmem>>, %arg4: memref<48x64xf32, #tpu.memory_space<vmem>>, %arg5: memref<48x1xf32, #tpu.memory_space<vmem>>, %arg6: memref<48x1xf32, #tpu.memory_space<vmem>>, %arg7: memref<48x1xf32, #tpu.memory_space<vmem>>, %arg8: memref<16x48xf32, #tpu.memory_space<vmem>>, %arg9: memref<16x1xf32, #tpu.memory_space<vmem>>, %arg10: memref<16x128xf32, #tpu.memory_space<vmem>>) attributes {dimension_semantics = [#tpu.dimension_semantics<parallel>], iteration_bounds = array<i64: 2>, scalar_prefetch = 0 : i64, scratch_operands = 0 : i64, tpu.core_type = #tpu.core_type<tc>, window_params = [{transform_indices = @transform_0, window_bounds = array<i64: 32, 128>}, {pipeline_mode = #tpu.pipeline_mode<synchronous>, transform_indices = @transform_1, window_bounds = array<i64: 64, 32>}, {pipeline_mode = #tpu.pipeline_mode<synchronous>, transform_indices = @transform_2, window_bounds = array<i64: 64, 1>}, {pipeline_mode = #tpu.pipeline_mode<synchronous>, transform_indices = @transform_3, window_bounds = array<i64: 48, 64>}, {pipeline_mode = #tpu.pipeline_mode<synchronous>, transform_indices = @transform_4, window_bounds = array<i64: 48, 1>}, {pipeline_mode = #tpu.pipeline_mode<synchronous>, transform_indices = @transform_5, window_bounds = array<i64: 48, 1>}, {pipeline_mode = #tpu.pipeline_mode<synchronous>, transform_indices = @transform_6, window_bounds = array<i64: 48, 1>}, {pipeline_mode = #tpu.pipeline_mode<synchronous>, transform_indices = @transform_7, window_bounds = array<i64: 16, 48>}, {pipeline_mode = #tpu.pipeline_mode<synchronous>, transform_indices = @transform_8, window_bounds = array<i64: 16, 1>}, {transform_indices = @transform_9, window_bounds = array<i64: 16, 128>}]} {
    %c0 = arith.constant 0 : index
    %c0_0 = arith.constant 0 : index
    %0 = vector.load %arg1[%c0, %c0_0] : memref<32x128xf32, #tpu.memory_space<vmem>>, vector<32x128xf32>
    %c0_1 = arith.constant 0 : index
    %c0_2 = arith.constant 0 : index
    %1 = vector.load %arg2[%c0_1, %c0_2] : memref<64x32xf32, #tpu.memory_space<vmem>>, vector<64x32xf32>
    %cst = arith.constant dense<0.000000e+00> : vector<64x128xf32>
    %2 = tpu.matmul %1, %0, %cst {dimension_numbers = #tpu.dot_dimension_numbers<[1], [0], [0], [1], [0, 0, 1, 1], [], []>} : vector<64x32xf32>, vector<32x128xf32>, vector<64x128xf32> -> vector<64x128xf32>
    %c0_3 = arith.constant 0 : index
    %c0_4 = arith.constant 0 : index
    %3 = vector.load %arg3[%c0_3, %c0_4] : memref<64x1xf32, #tpu.memory_space<vmem>>, vector<64x1xf32>
    %4 = vector.broadcast %3 : vector<64x1xf32> to vector<64x128xf32>
    %5 = arith.addf %2, %4 : vector<64x128xf32>
    %cst_5 = arith.constant 0.000000e+00 : f32
    %6 = vector.broadcast %cst_5 : f32 to vector<64x128xf32>
    %7 = arith.maximumf %5, %6 : vector<64x128xf32>
    %c0_6 = arith.constant 0 : index
    %c0_7 = arith.constant 0 : index
    %8 = vector.load %arg4[%c0_6, %c0_7] : memref<48x64xf32, #tpu.memory_space<vmem>>, vector<48x64xf32>
    %cst_8 = arith.constant dense<0.000000e+00> : vector<48x128xf32>
    %9 = tpu.matmul %8, %7, %cst_8 {dimension_numbers = #tpu.dot_dimension_numbers<[1], [0], [0], [1], [0, 0, 1, 1], [], []>} : vector<48x64xf32>, vector<64x128xf32>, vector<48x128xf32> -> vector<48x128xf32>
    %c0_9 = arith.constant 0 : index
    %c0_10 = arith.constant 0 : index
    %10 = vector.load %arg5[%c0_9, %c0_10] : memref<48x1xf32, #tpu.memory_space<vmem>>, vector<48x1xf32>
    %11 = vector.broadcast %10 : vector<48x1xf32> to vector<48x128xf32>
    %12 = arith.addf %9, %11 : vector<48x128xf32>
    %cst_11 = arith.constant dense<0.000000e+00> : vector<128xf32>
    %13 = vector.multi_reduction <add>, %12, %cst_11 [0] : vector<48x128xf32> to vector<128xf32>
    %14 = vector.shape_cast %13 : vector<128xf32> to vector<1x128xf32>
    %cst_12 = arith.constant 4.800000e+01 : f32
    %15 = vector.broadcast %cst_12 : f32 to vector<1x128xf32>
    %16 = arith.divf %14, %15 : vector<1x128xf32>
    %17 = arith.mulf %12, %12 : vector<48x128xf32>
    %cst_13 = arith.constant dense<0.000000e+00> : vector<128xf32>
    %18 = vector.multi_reduction <add>, %17, %cst_13 [0] : vector<48x128xf32> to vector<128xf32>
    %19 = vector.shape_cast %18 : vector<128xf32> to vector<1x128xf32>
    %cst_14 = arith.constant 4.800000e+01 : f32
    %20 = vector.broadcast %cst_14 : f32 to vector<1x128xf32>
    %21 = arith.divf %19, %20 : vector<1x128xf32>
    %22 = arith.mulf %16, %16 : vector<1x128xf32>
    %23 = arith.subf %21, %22 : vector<1x128xf32>
    %24 = vector.broadcast %16 : vector<1x128xf32> to vector<48x128xf32>
    %25 = arith.subf %12, %24 : vector<48x128xf32>
    %cst_15 = arith.constant 9.99999974E-6 : f32
    %26 = vector.broadcast %cst_15 : f32 to vector<1x128xf32>
    %27 = arith.addf %23, %26 : vector<1x128xf32>
    %28 = math.rsqrt %27 : vector<1x128xf32>
    %29 = vector.broadcast %28 : vector<1x128xf32> to vector<48x128xf32>
    %30 = arith.mulf %25, %29 : vector<48x128xf32>
    %c0_16 = arith.constant 0 : index
    %c0_17 = arith.constant 0 : index
    %31 = vector.load %arg6[%c0_16, %c0_17] : memref<48x1xf32, #tpu.memory_space<vmem>>, vector<48x1xf32>
    %32 = vector.broadcast %31 : vector<48x1xf32> to vector<48x128xf32>
    %33 = arith.mulf %30, %32 : vector<48x128xf32>
    %c0_18 = arith.constant 0 : index
    %c0_19 = arith.constant 0 : index
    %34 = vector.load %arg7[%c0_18, %c0_19] : memref<48x1xf32, #tpu.memory_space<vmem>>, vector<48x1xf32>
    %35 = vector.broadcast %34 : vector<48x1xf32> to vector<48x128xf32>
    %36 = arith.addf %33, %35 : vector<48x128xf32>
    %cst_20 = arith.constant 0.000000e+00 : f32
    %37 = vector.broadcast %cst_20 : f32 to vector<48x128xf32>
    %38 = arith.cmpf ogt, %36, %37 : vector<48x128xf32>
    %cst_21 = arith.constant 1.000000e-01 : f32
    %39 = vector.broadcast %cst_21 : f32 to vector<48x128xf32>
    %40 = arith.mulf %39, %36 : vector<48x128xf32>
    %41 = arith.select %38, %36, %40 : vector<48x128xi1>, vector<48x128xf32>
    %c0_22 = arith.constant 0 : index
    %c0_23 = arith.constant 0 : index
    %42 = vector.load %arg8[%c0_22, %c0_23] : memref<16x48xf32, #tpu.memory_space<vmem>>, vector<16x48xf32>
    %cst_24 = arith.constant dense<0.000000e+00> : vector<16x128xf32>
    %43 = tpu.matmul %42, %41, %cst_24 {dimension_numbers = #tpu.dot_dimension_numbers<[1], [0], [0], [1], [0, 0, 1, 1], [], []>} : vector<16x48xf32>, vector<48x128xf32>, vector<16x128xf32> -> vector<16x128xf32>
    %c0_25 = arith.constant 0 : index
    %c0_26 = arith.constant 0 : index
    %44 = vector.load %arg9[%c0_25, %c0_26] : memref<16x1xf32, #tpu.memory_space<vmem>>, vector<16x1xf32>
    %45 = vector.broadcast %44 : vector<16x1xf32> to vector<16x128xf32>
    %46 = arith.addf %43, %45 : vector<16x128xf32>
    %c0_27 = arith.constant 0 : index
    %c0_28 = arith.constant 0 : index
    %47 = vector.load %arg10[%c0_27, %c0_28] : memref<16x128xf32, #tpu.memory_space<vmem>>, vector<16x128xf32>
    tpu.vector_store %arg10[%c0_27, %c0_28], %46 {strides = array<i32>} : memref<16x128xf32, #tpu.memory_space<vmem>>, vector<16x128xf32>,
    return
  }
  func.func @transform_0(%arg0: i32) -> (i32, i32) {
    %c0_i32 = arith.constant 0 : i32
    %c0_i32_0 = arith.constant 0 : i32
    return %c0_i32, %arg0 : i32, i32
  }
  func.func @transform_1(%arg0: i32) -> (i32, i32) {
    %c0_i32 = arith.constant 0 : i32
    %c0_i32_0 = arith.constant 0 : i32
    %c0_i32_1 = arith.constant 0 : i32
    return %c0_i32, %c0_i32_0 : i32, i32
  }
  func.func @transform_2(%arg0: i32) -> (i32, i32) {
    %c0_i32 = arith.constant 0 : i32
    %c0_i32_0 = arith.constant 0 : i32
    %c0_i32_1 = arith.constant 0 : i32
    return %c0_i32, %c0_i32_0 : i32, i32
  }
  func.func @transform_3(%arg0: i32) -> (i32, i32) {
    %c0_i32 = arith.constant 0 : i32
    %c0_i32_0 = arith.constant 0 : i32
    %c0_i32_1 = arith.constant 0 : i32
    return %c0_i32, %c0_i32_0 : i32, i32
  }
  func.func @transform_4(%arg0: i32) -> (i32, i32) {
    %c0_i32 = arith.constant 0 : i32
    %c0_i32_0 = arith.constant 0 : i32
    %c0_i32_1 = arith.constant 0 : i32
    return %c0_i32, %c0_i32_0 : i32, i32
  }
  func.func @transform_5(%arg0: i32) -> (i32, i32) {
    %c0_i32 = arith.constant 0 : i32
    %c0_i32_0 = arith.constant 0 : i32
    %c0_i32_1 = arith.constant 0 : i32
    return %c0_i32, %c0_i32_0 : i32, i32
  }
  func.func @transform_6(%arg0: i32) -> (i32, i32) {
    %c0_i32 = arith.constant 0 : i32
    %c0_i32_0 = arith.constant 0 : i32
    %c0_i32_1 = arith.constant 0 : i32
    return %c0_i32, %c0_i32_0 : i32, i32
  }
  func.func @transform_7(%arg0: i32) -> (i32, i32) {
    %c0_i32 = arith.constant 0 : i32
    %c0_i32_0 = arith.constant 0 : i32
    %c0_i32_1 = arith.constant 0 : i32
    return %c0_i32, %c0_i32_0 : i32, i32
  }
  func.func @transform_8(%arg0: i32) -> (i32, i32) {
    %c0_i32 = arith.constant 0 : i32
    %c0_i32_0 = arith.constant 0 : i32
    %c0_i32_1 = arith.constant 0 : i32
    return %c0_i32, %c0_i32_0 : i32, i32
  }
  func.func @transform_9(%arg0: i32) -> (i32, i32) {
    %c0_i32 = arith.constant 0 : i32
    %c0_i32_0 = arith.constant 0 : i32
    return %c0_i32, %arg0 : i32, i32
  }
}

</mosaic_0001>

<bundles_post_ra>
// kernel: tpu_custom_call.1
= control target key start
LH: loop header
LB: loop body
LE: loop exit
PB: predicated region body
PF: predicated region fallthrough
CT: control target
= control target key end

     0   :  { %14 = vsyncpa [#allocation4], 0  ;;  %s1655_s0 = inlined_call_operand.vmem [shape: f32[32,256], index: 0, kind: input, shape index: {}]   ;;  %s1656_s1 = inlined_call_operand.vmem [shape: f32[64,32], index: 1, kind: input, shape index: {}]   ;;  %s1657_s2 = inlined_call_operand.vmem [shape: f32[64,1], index: 2, kind: input, shape index: {}]   ;;  %s1658_s3 = inlined_call_operand.vmem [shape: f32[48,64], index: 3, kind: input, shape index: {}]   ;;  %s1659_s4 = inlined_call_operand.vmem [shape: f32[48,1], index: 4, kind: input, shape index: {}]   ;;  %s1660_s5 = inlined_call_operand.vmem [shape: f32[48,1], index: 5, kind: input, shape index: {}]   ;;  %s1661_s6 = inlined_call_operand.vmem [shape: f32[48,1], index: 6, kind: input, shape index: {}]   ;;  %s1662_s7 = inlined_call_operand.vmem [shape: f32[16,48], index: 7, kind: input, shape index: {}]   ;;  %s1663_s8 = inlined_call_operand.vmem [shape: f32[16,1], index: 8, kind: input, shape index: {}]   ;;  %s1664_s9 = inlined_call_operand.hbm [shape: f32[16,256], index: 9, kind: output, shape index: {}]  }
   0x1   :  { %16 = vsyncpa [#allocation4 + $0x1], 0  ;;  %s1383_s30 = smov 0   ;;  %s1385_s10 = smov 0  }
   0x2   :  { %s1387_s11 = smov 0   ;;  %s1389_s12 = smov 0  }
   0x3 LB: > { %s1058_s13 = sadd.s32 4294967295, %s1326_s12   ;;  %s1059_s14 = sadd.s32 4294967294, %s1326_s12   ;;  %s1326_s12 = sphi %s1389_s12, %s1670_s12   ;;  %s1322_s11 = sphi %s1387_s11, %s1669_s11   ;;  %s1318_s10 = sphi %s1385_s10, %s1668_s10   ;;  %s1314_s30 = sphi %s1383_s30, %s1667_s30  }
   0x4   : > { %s1406_s15 = sadd.s32 1, %s1326_s12   ;;  %s29_s16 = sadd.s32 1, %s1322_s11 }
   0x5   : > { %s26_s17 = ssub.s32 %s1326_s12, %s1406_s15  ;;  %p36_p0 = scmp.ne.s32.totalorder %s1322_s11, %s1318_s10 }
   0x6   : > { %p27_p1 = scmp.eq.s32.totalorder %s26_s17, 0  ;;  %p37_p2 = scmp.eq.s32.totalorder %s1326_s12, 0 }
   0x7   : > { %p234_p3 = scmp.eq.s32.totalorder %s1058_s13, 1  ;;  %p239_p4 = scmp.ne.s32.totalorder %s1318_s10, %s1314_s30 }
   0x8   : > { %s1419_s18 = scalar_select %p27_p1, %s1322_s11, %s29_s16  }
   0x9   : > { %p38_p5 = por %p37_p2, %p36_p0  ;;  %p1421_p6 = por %p234_p3, %p36_p0 }
   0xa   : > { %p240_p7 = scmp.eq.s32.totalorder %s1059_s14, 1  ;;  %p1061_p9 = scmp.ge.s32.totalorder %s1326_s12, 2 }
   0xc   : > { %p1425_p8 = por %p240_p7, %p239_p4  ;;  %280 = sbr.rel (%p1061_p9) target bundleno = 26 (0x1a), region = 48 }
  0x13   : > { %283 = sbr.rel (!%p38_p5) target bundleno = 26 (0x1a), region = 52  ;;  %s285_s21 = sand.u32 (%p38_p5), 1, %s1322_s11  }
  0x14   : > { %s1063_s22 = sshll.u32 (%p38_p5), %s1326_s12, 3  ;;  %s1062_s23 = sshll.u32 (%p38_p5), %s285_s21, 5 }
  0x15   : > { %s289_s26 = scalar_lea.vmem (%p38_p5), %s1655_s0, %s1063_s22  ;;  %s287_s27 = scalar_lea.vmem (%p38_p5), [#allocation2], %s1062_s23 }
  0x16   : > { %v323_v0 = vld [vmem:[%s289_s26] sm:$0xff] (%p38_p5)  ;;  %v325_v1 = vld [vmem:[%s289_s26 + $0x10] sm:$0xff] (%p38_p5) }
  0x17   : > { %v327_v2 = vld [vmem:[%s289_s26 + $0x20] sm:$0xff] (%p38_p5)  ;;  %324 = vst [vmem:[%s287_s27] sm:$0xff] (%p38_p5), %v323_v0  ;;  %326 = vst [vmem:[%s287_s27 + $0x8] sm:$0xff] (%p38_p5), %v325_v1  ;;  %v329_v3 = vld [vmem:[%s289_s26 + $0x30] sm:$0xff] (%p38_p5) }
  0x18   : > { %328 = vst [vmem:[%s287_s27 + $0x10] sm:$0xff] (%p38_p5), %v327_v2  ;;  %330 = vst [vmem:[%s287_s27 + $0x18] sm:$0xff] (%p38_p5), %v329_v3 }
  0x1a PF: > { %p1064_p10 = scmp.ge.s32.totalorder %s1326_s12, 1  ;;  %p335_p11 = scmp.lt.s32.totalorder %s1326_s12, 3 }
  0x1c   : > { %p336_p12 = pnand %p1064_p10, %p335_p11 }
  0x1d   : > { %s1440_s28 = sand.u32 (!%p336_p12), 1, %s1318_s10   ;;  %v381_v4 = vld [vmem:[%s1656_s1] sm:$0xff] (!%p336_p12)  ;;  %vm437_vm0 = vcmask (!%p336_p12), 261120   ;;  %v1328_v5 = vmov (!%p336_p12), 0   ;;  %v391_v12 = vld [vmem:[%s1657_s2 + $0x10] sm:$0xff] (!%p336_p12)  ;;  %v390_v13 = vld [vmem:[%s1657_s2 + $0x8] sm:$0xff] (!%p336_p12) }
  0x1e   : > { %339 = sbr.rel (%p336_p12) target bundleno = 790 (0x316), region = 90  ;;  %s1065_s16 = sshll.u32 (!%p336_p12), %s1440_s28, 5  ;;  %1129 = vmatprep.mubr.msk.f32.mxu0 (!%p336_p12), %vm437_vm0, %v381_v4  ;;  %1260 = vset.pattern.permute.xlu0 (!%p336_p12), %v1328_v5  ;;  %v389_v6 = vld [vmem:[%s1657_s2] sm:$0xff] (!%p336_p12)  ;;  %v392_v15 = vld [vmem:[%s1657_s2 + $0x18] sm:$0xff] (!%p336_p12)  ;;  %v394_v17 = vld [vmem:[%s1657_s2 + $0x28] sm:$0xff] (!%p336_p12)  ;;  %vm617_vm1 = vcmask (!%p336_p12), 523264  }
  0x1f   : > { %1261 = vset.pattern.permute.xlu1 (!%p336_p12), %v1328_v5  ;;  %s344_s22 = scalar_lea.vmem (!%p336_p12), [#allocation2], %s1065_s16  ;;  %399 = vperm.xlu0 (!%p336_p12), %1260, %v389_v6   ;;  %v393_v16 = vld [vmem:[%s1657_s2 + $0x20] sm:$0xff] (!%p336_p12)  ;;  %v382_v18 = vld [vmem:[%s1656_s1 + $0x8] sm:$0xff] (!%p336_p12)  ;;  %v383_v19 = vld [vmem:[%s1656_s1 + $0x10] sm:$0xff] (!%p336_p12)  ;;  %vm894_vm2 = vcmask (!%p336_p12), 392192   ;;  %s1066_s16 = sshll.u32 (!%p336_p12), %s1440_s28, 4 }
  0x20   : > { %v377_v7 = vld [vmem:[%s344_s22] sm:$0xff] (!%p336_p12)  ;;  %v378_v8 = vld [vmem:[%s344_s22 + $0x8] sm:$0xff] (!%p336_p12)  ;;  %v379_v9 = vld [vmem:[%s344_s22 + $0x10] sm:$0xff] (!%p336_p12)  ;;  %409 = vperm.xlu1 (!%p336_p12), %1261, %v391_v12   ;;  %s376_s17 = scalar_lea.vmem (!%p336_p12), [#allocation3], %s1066_s16  ;;  %s979_s26 = scalar_lea.sflag (!%p336_p12), [#allocation4], %s1440_s28 }
  0x21   : > { %v1181_v10 = vpack.c.bf16 (!%p336_p12), %v378_v8, %v377_v7  ;;  %v380_v11 = vld [vmem:[%s344_s22 + $0x18] sm:$0xff] (!%p336_p12)  ;;  %v395_v20 = vld [vmem:[%s1657_s2 + $0x30] sm:$0xff] (!%p336_p12)  ;;  %v385_v23 = vld [vmem:[%s1656_s1 + $0x20] sm:$0xff] (!%p336_p12)  ;;  %s991_s21 = sshll.u32 (!%p336_p12), %s376_s17, 4  ;;  %s1084_s22 = sshll.u32 (!%p336_p12), %s1058_s13, 7  ;;  %s1606_s21 = int_to_ptr.vmem [resolvable:$true] %s991_s21 }
  0x22   : > { %v1185_v14 = vpack.c.bf16 (!%p336_p12), %v380_v11, %v379_v9  ;;  %v396_v21 = vld [vmem:[%s1657_s2 + $0x38] sm:$0xff] (!%p336_p12)  ;;  %v581_v24 = vld [vmem:[%s1659_s4] sm:$0xff] (!%p336_p12)  ;;  %v582_v25 = vld [vmem:[%s1659_s4 + $0x8] sm:$0xff] (!%p336_p12)  ;;  %s1611_s25 = scalar_lea.hbm (!%p336_p12), %s1664_s9, %s1084_s22  ;;  %s1264_s13 = scalar_lea.vmem (!%p336_p12), %s1606_s21, 256 }
  0x23   : > { %1182 = vmatprep.subr.bf16.mxu0 (!%p336_p12), %v1181_v10  ;;  %404 = vperm.xlu0 (!%p336_p12), %1260, %v390_v13   ;;  %v384_v22 = vld [vmem:[%s1656_s1 + $0x18] sm:$0xff] (!%p336_p12)  ;;  %v386_v26 = vld [vmem:[%s1656_s1 + $0x28] sm:$0xff] (!%p336_p12)  ;;  %v387_v27 = vld [vmem:[%s1656_s1 + $0x30] sm:$0xff] (!%p336_p12)  ;;  %p1265_p13 = scmp.ne.s32.totalorder (!%p336_p12), %s1606_s21, %s1264_s13  ;;  %s1329_s27 = smov (!%p336_p12), [#allocation3]  }
  0x24   : > { %1184 = vmatpush3.bf16.msra.mxu0 (!%p336_p12), %v1181_v10  ;;  %414 = vperm.xlu1 (!%p336_p12), %1261, %v392_v15   ;;  %v583_v28 = vld [vmem:[%s1659_s4 + $0x10] sm:$0xff] (!%p336_p12)  ;;  %v584_v29 = vld [vmem:[%s1659_s4 + $0x18] sm:$0xff] (!%p336_p12)  ;;  %v585_v31 = vld [vmem:[%s1659_s4 + $0x20] sm:$0xff] (!%p336_p12)  ;;  %s1268_s29 = sshll.u32 (!%p336_p12), %s1329_s27, 4  ;;  %s1269_s29 = int_to_ptr.vmem [resolvable:$false] %s1268_s29 }
  0x25   : > { %1186 = vmatprep.subr.bf16.mxu0 %v1185_v14  ;;  %v388_v30 = vld [vmem:[%s1656_s1 + $0x38] sm:$0xff]  ;;  %v586_v32 = vld [vmem:[%s1659_s4 + $0x28] sm:$0xff]  ;;  %v778_v33 = vld [vmem:[%s1660_s5] sm:$0xff]  ;;  %p1266_p0 = pnand %p1265_p13, %p1421_p6  ;;  %s1270_s14 = scalar_lea.vmem %s1269_s29, 512 }
  0x26   : > { %v779_v34 = vld [vmem:[%s1660_s5 + $0x8] sm:$0xff]  ;;  %v820_v35 = vld [vmem:[%s1661_s6] sm:$0xff]  ;;  %v780_v37 = vld [vmem:[%s1660_s5 + $0x10] sm:$0xff]  ;;  %p1271_p2 = scmp.lt.s32.totalorder %s1606_s21, %s1269_s29  ;;  %p1272_p3 = scmp.lt.s32.totalorder %s1270_s14, %s1264_s13 }
  0x27   : > { %419 = vperm.xlu0 %1260, %v393_v16   ;;  %v821_v36 = vld [vmem:[%s1661_s6 + $0x8] sm:$0xff]  ;;  %v781_v38 = vld [vmem:[%s1660_s5 + $0x18] sm:$0xff]  ;;  %v822_v39 = vld [vmem:[%s1661_s6 + $0x10] sm:$0xff]  ;;  %p1267_p1 = pneg %p1266_p0 }
  0x28   : > { %1188 = vmatpush3.bf16.msra.mxu0 %v1185_v14  ;;  %424 = vperm.xlu1 %1261, %v394_v17   ;;  %v823_v40 = vld [vmem:[%s1661_s6 + $0x18] sm:$0xff]  ;;  %v782_v41 = vld [vmem:[%s1660_s5 + $0x20] sm:$0xff]  ;;  %v783_v42 = vld [vmem:[%s1660_s5 + $0x28] sm:$0xff]  ;;  %p1273_p4 = por %p1272_p3, %p1271_p2 }
  0x29   : > { %v824_v43 = vld [vmem:[%s1661_s6 + $0x20] sm:$0xff]  ;;  %v825_v44 = vld [vmem:[%s1661_s6 + $0x28] sm:$0xff] }
  0x2a   : > { %v882_v45 = vld [vmem:[%s1663_s8] sm:$0xff]  ;;  %v883_v46 = vld [vmem:[%s1663_s8 + $0x8] sm:$0xff]  ;;  %p1274_p5 = pnand %p1273_p4, %p1267_p1 }
  0x2b   : > { %1130 = vmatmul.mubr.msk.f32.vlgmr.msra.gmra.mrb[0].mxu0 %vm437_vm0, %v382_v18  ;;  %429 = vperm.xlu0 %1260, %v395_v20   ;;  %v575_v47 = vld [vmem:[%s1658_s3] sm:$0xff]  ;;  %v576_v20 = vld [vmem:[%s1658_s3 + $0x8] sm:$0xff] }
  0x2c   : > { %1132 = vmatprep.mubr.msk.f32.mxu0 %vm437_vm0, %v383_v19  ;;  %434 = vperm.xlu1 %1261, %v396_v21   ;;  %v577_v21 = vld [vmem:[%s1658_s3 + $0x10] sm:$0xff] }
  0x2d   : > { %1157 = vmatprep.mubr.msk.f32.mxu1 %vm617_vm1, %v575_v47 }
  0x2f   : > { %1133 = vmatmul.mubr.msk.f32.gmra.mrb[2].mxu0 %vm437_vm0, %v384_v22  ;;  %589 = vperm.xlu0 %1260, %v581_v24   ;;  %v578_v22 = vld [vmem:[%s1658_s3 + $0x18] sm:$0xff]  ;;  %v580_v24 = vld [vmem:[%s1658_s3 + $0x28] sm:$0xff] }
  0x30   : > { %1135 = vmatprep.mubr.msk.f32.mxu0 %vm437_vm0, %v385_v23  ;;  %594 = vperm.xlu1 %1261, %v582_v25   ;;  %v579_v23 = vld [vmem:[%s1658_s3 + $0x20] sm:$0xff] }
  0x31   : > { %v880_v25 = vld [vmem:[%s1662_s7] sm:$0xff] }
  0x33   : > { %1136 = vmatmul.mubr.msk.f32.gmra.mrb[4].mxu0 %vm437_vm0, %v386_v26  ;;  %599 = vperm.xlu0 %1260, %v583_v28  }
  0x34   : > { %1138 = vmatprep.mubr.msk.f32.mxu0 %vm437_vm0, %v387_v27  ;;  %604 = vperm.xlu1 %1261, %v584_v29  }
  0x37   : > { %1139 = vmatmul.mubr.msk.f32.gmra.mrb[6].mxu0 %vm437_vm0, %v388_v30  ;;  %609 = vperm.xlu0 %1260, %v585_v31  }
  0x38   : > { %614 = vperm.xlu1 %1261, %v586_v32   ;;  %1178 = vmatprep.mubr.msk.f32.mxu0 %vm894_vm2, %v880_v25 }
  0x3b   : > { %786 = vperm.xlu0 %1260, %v778_v33  }
  0x3c   : > { %791 = vperm.xlu1 %1261, %v779_v34  }
  0x3f   : > { %828 = vperm.xlu0 %1260, %v820_v35  }
  0x40   : > { %833 = vperm.xlu1 %1261, %v821_v36  }
  0x43   : > { %796 = vperm.xlu0 %1260, %v780_v37  }
  0x44   : > { %801 = vperm.xlu1 %1261, %v781_v38  }
  0x47   : > { %838 = vperm.xlu0 %1260, %v822_v39  }
  0x48   : > { %843 = vperm.xlu1 %1261, %v823_v40  }
  0x4b   : > { %806 = vperm.xlu0 %1260, %v782_v41  }
  0x4c   : > { %811 = vperm.xlu1 %1261, %v783_v42  }
  0x4f   : > { %848 = vperm.xlu0 %1260, %v824_v43  }
  0x50   : > { %853 = vperm.xlu1 %1261, %v825_v44  }
  0x53   : > { %886 = vperm.xlu0 %1260, %v882_v45  }
  0x54   : > { %891 = vperm.xlu1 %1261, %v883_v46  }
  0x9e   : > { %v400_v48 = vpop.permute.xlu0 %399 }
  0x9f   : > { %v410_v49 = vpop.permute.xlu1 %409 }
  0xa2   : > { %v405_v50 = vpop.permute.xlu0 %404 }
  0xa3   : > { %v415_v51 = vpop.permute.xlu1 %414 }
  0xa6   : > { %v420_v0 = vpop.permute.xlu0 %419 }
  0xa7   : > { %v425_v61 = vpop.permute.xlu1 %424 }
  0xaa   : > { %v430_v12 = vpop.permute.xlu0 %429 }
  0xab   : > { %v435_v9 = vpop.permute.xlu1 %434 }
  0xae   : > { %v590_v26 = vpop.permute.xlu0 %589 }
  0xaf   : > { %v595_v27 = vpop.permute.xlu1 %594 }
  0xb2   : > { %v600_v31 = vpop.permute.xlu0 %599 }
  0xb3   : > { %v605_v33 = vpop.permute.xlu1 %604 }
  0xb6   : > { %v610_v42 = vpop.permute.xlu0 %609 }
  0xb7   : > { %v615_v46 = vpop.permute.xlu1 %614 }
  0xfe   : > { %v1131_v52 = vpop.f32.mrb[0].mxu0 }
  0xff   : > { %v534_v53 = vadd.f32 %v1131_v52, %v405_v50  ;;  %v528_v54 = vpop.f32.mrb[1].mxu0 }
 0x100   : > { %v529_v55 = vadd.f32 %v528_v54, %v400_v48 }
 0x101   : > { %v568_v56 = vmax.f32 %v534_v53, 0.0 }
 0x102   : > { %v567_v57 = vmax.f32 %v529_v55, 0.0  ;;  %v1134_v58 = vpop.f32.mrb[2].mxu0 }
 0x103   : > { %v544_v59 = vadd.f32 %v1134_v58, %v415_v51  ;;  %v538_v60 = vpop.f32.mrb[3].mxu0 }
 0x104   : > { %v539_v62 = vadd.f32 %v538_v60, %v410_v49  ;;  %v1189_v63 = vpack.c.bf16 %v568_v56, %v567_v57 }
 0x105   : > { %v570_v1 = vmax.f32 %v544_v59, 0.0 }
 0x106   : > { %v569_v2 = vmax.f32 %v539_v62, 0.0  ;;  %v1137_v3 = vpop.f32.mrb[4].mxu0  ;;  %1190 = vmatprep.subr.bf16.mxu1 %v1189_v63 }
 0x107   : > { %v554_v4 = vadd.f32 %v1137_v3, %v425_v61  ;;  %v548_v5 = vpop.f32.mrb[5].mxu0  ;;  %1192 = vmatpush3.bf16.msra.mxu1 %v1189_v63  ;;  %v787_v63 = vpop.permute.xlu0 %786 }
 0x108   : > { %v1193_v6 = vpack.c.bf16 %v570_v1, %v569_v2  ;;  %v549_v7 = vadd.f32 %v548_v5, %v420_v0  ;;  %v792_v2 = vpop.permute.xlu1 %791 }
 0x109   : > { %v572_v8 = vmax.f32 %v554_v4, 0.0 }
 0x10a   : > { %v571_v10 = vmax.f32 %v549_v7, 0.0  ;;  %v1140_v11 = vpop.f32.mrb[6].mxu0  ;;  %1194 = vmatprep.subr.bf16.mxu1 %v1193_v6 }
 0x10b   : > { %v564_v13 = vadd.f32 %v1140_v11, %v435_v9  ;;  %v558_v14 = vpop.f32.mrb[7].mxu0  ;;  %1196 = vmatpush3.bf16.msra.mxu1 %v1193_v6  ;;  %v829_v7 = vpop.permute.xlu0 %828 }
 0x10c   : > { %v1197_v15 = vpack.c.bf16 %v572_v8, %v571_v10  ;;  %v559_v16 = vadd.f32 %v558_v14, %v430_v12  ;;  %v834_v10 = vpop.permute.xlu1 %833 }
 0x10d   : > { %v574_v17 = vmax.f32 %v564_v13, 0.0 }
 0x10e   : > { %v573_v18 = vmax.f32 %v559_v16, 0.0  ;;  %1198 = vmatprep.subr.bf16.mxu1 %v1197_v15 }
 0x10f   : > { %1200 = vmatpush3.bf16.msra.mxu1 %v1197_v15 }
 0x110   : > { %v1201_v19 = vpack.c.bf16 %v574_v17, %v573_v18 }
 0x112   : > { %1202 = vmatprep.subr.bf16.mxu1 %v1201_v19 }
 0x113   : > { %1204 = vmatpush3.bf16.msra.mxu1 %v1201_v19 }
 0x116   : > { %1158 = vmatmul.mubr.msk.f32.vlgmr.msra.gmra.mrb[0].mxu1 %vm617_vm1, %v576_v20 }
 0x117   : > { %1160 = vmatprep.mubr.msk.f32.mxu1 %vm617_vm1, %v577_v21  ;;  %v797_v21 = vpop.permute.xlu0 %796 }
 0x11a   : > { %1161 = vmatmul.mubr.msk.f32.gmra.mrb[2].mxu1 %vm617_vm1, %v578_v22 }
 0x11b   : > { %1163 = vmatprep.mubr.msk.f32.mxu1 %vm617_vm1, %v579_v23  ;;  %v802_v23 = vpop.permute.xlu1 %801  ;;  %v839_v25 = vpop.permute.xlu0 %838 }
 0x11e   : > { %1164 = vmatmul.mubr.msk.f32.gmra.mrb[4].mxu1 %vm617_vm1, %v580_v24 }
 0x1e9   : > { %v1159_v28 = vpop.f32.mrb[0].mxu1 }
 0x1ea   : > { %v1587_v29 = vadd.f32 %v1159_v28, %v595_v27  ;;  %v702_v30 = vpop.f32.mrb[1].mxu1  ;;  %v807_v27 = vpop.permute.xlu0 %806 }
 0x1eb   : > { %v1589_v32 = vadd.f32 %v702_v30, %v590_v26  ;;  %v844_v26 = vpop.permute.xlu1 %843 }
 0x1ec   : > { %v745_v34 = vmul.f32 %v1587_v29, %v1587_v29 }
 0x1ed   : > { %v731_v35 = vadd.f32 %v1587_v29, %v1589_v32  ;;  %v744_v36 = vmul.f32 %v1589_v32, %v1589_v32  ;;  %v1162_v37 = vpop.f32.mrb[2].mxu1 }
 0x1ee   : > { %v718_v38 = vadd.f32 %v1162_v37, %v605_v33  ;;  %v712_v39 = vpop.f32.mrb[3].mxu1 }
 0x1ef   : > { %v750_v40 = vadd.f32 %v745_v34, %v744_v36  ;;  %v713_v41 = vadd.f32 %v712_v39, %v600_v31  ;;  %v812_v28 = vpop.permute.xlu1 %811 }
 0x1f0   : > { %v747_v47 = vmul.f32 %v718_v38, %v718_v38 }
 0x1f1   : > { %v732_v43 = vadd.f32 %v731_v35, %v713_v41  ;;  %v746_v44 = vmul.f32 %v713_v41, %v713_v41  ;;  %v1165_v45 = vpop.f32.mrb[4].mxu1 }
 0x1f2   : > { %v722_v48 = vpop.f32.mrb[5].mxu1  ;;  %v728_v50 = vadd.f32 %v1165_v45, %v615_v46 }
 0x1f3   : > { %v751_v49 = vadd.f32 %v750_v40, %v746_v44  ;;  %v723_v51 = vadd.f32 %v722_v48, %v610_v42  ;;  %v733_v52 = vadd.f32 %v732_v43, %v718_v38  ;;  %v849_v40 = vpop.permute.xlu0 %848  ;;  %v854_v43 = vpop.permute.xlu1 %853 }
 0x1f4   : > { %v749_v56 = vmul.f32 %v728_v50, %v728_v50 }
 0x1f5   : > { %v734_v53 = vadd.f32 %v733_v52, %v723_v51  ;;  %v748_v54 = vmul.f32 %v723_v51, %v723_v51  ;;  %v752_v55 = vadd.f32 %v751_v49, %v747_v47 }
 0x1f7   : > { %v735_v57 = vadd.f32 %v734_v53, %v728_v50  ;;  %v753_v58 = vadd.f32 %v752_v55, %v748_v54 }
 0x1f9   : > { %v736_v59 = vrot.slane %v735_v57, 4  ;;  %v754_v60 = vadd.f32 %v753_v58, %v749_v56 }
 0x1fb   : > { %v737_v61 = vadd.f32 %v736_v59, %v735_v57  ;;  %v755_v62 = vrot.slane %v754_v60, 4 }
 0x1fd   : > { %v738_v0 = vrot.slane %v737_v61, 2  ;;  %v756_v1 = vadd.f32 %v755_v62, %v754_v60 }
 0x1ff   : > { %v739_v3 = vadd.f32 %v738_v0, %v737_v61  ;;  %v757_v4 = vrot.slane %v756_v1, 2 }
 0x201   : > { %v740_v5 = vrot.slane %v739_v3, 1  ;;  %v758_v6 = vadd.f32 %v757_v4, %v756_v1  ;;  %v881_v1 = vld [vmem:[%s1662_s7 + $0x8] sm:$0xff]  ;;  %v887_v4 = vpop.permute.xlu0 %886 }
 0x203   : > { %v741_v8 = vadd.f32 %v740_v5, %v739_v3  ;;  %v759_v9 = vrot.slane %v758_v6, 1 }
 0x205   : > { %v743_v11 = vmul.f32 0.020833334, %v741_v8  ;;  %v760_v12 = vadd.f32 %v759_v9, %v758_v6 }
 0x207   : > { %v761_v13 = vmul.f32 0.020833334, %v760_v12  ;;  %v762_v14 = vmul.f32 %v743_v11, %v743_v11  ;;  %v768_v15 = vsub.f32 %v723_v51, %v743_v11  ;;  %v764_v16 = vsub.f32 %v1589_v32, %v743_v11 }
 0x208   : > { %v765_v17 = vsub.f32 %v1587_v29, %v743_v11  ;;  %v766_v18 = vsub.f32 %v713_v41, %v743_v11  ;;  %v767_v19 = vsub.f32 %v718_v38, %v743_v11  ;;  %v769_v20 = vsub.f32 %v728_v50, %v743_v11 }
 0x209   : > { %v763_v22 = vsub.f32 %v761_v13, %v762_v14 }
 0x20b   : > { %v770_v24 = vadd.f32 1e-05, %v763_v22 }
 0x20d   : > { %1262 = vrsqrt.f32 %v770_v24 }
 0x217   : > { %v1263_v30 = vpop.eup %1262 }
 0x218   : > { %v776_v31 = vmul.f32 %v1263_v30, %v768_v15  ;;  %v772_v33 = vmul.f32 %v1263_v30, %v764_v16  ;;  %v773_v34 = vmul.f32 %v1263_v30, %v765_v17  ;;  %v774_v35 = vmul.f32 %v1263_v30, %v766_v18 }
 0x219   : > { %v775_v32 = vmul.f32 %v1263_v30, %v767_v19  ;;  %v777_v36 = vmul.f32 %v1263_v30, %v769_v20 }
 0x21a   : > { %v818_v29 = vmul.f32 %v807_v27, %v776_v31  ;;  %v814_v37 = vmul.f32 %v787_v63, %v772_v33  ;;  %v815_v38 = vmul.f32 %v792_v2, %v773_v34  ;;  %v816_v39 = vmul.f32 %v797_v21, %v774_v35  ;;  %v892_v2 = vpop.permute.xlu1 %891 }
 0x21b   : > { %v817_v41 = vmul.f32 %v802_v23, %v775_v32  ;;  %v819_v42 = vmul.f32 %v812_v28, %v777_v36 }
 0x21c   : > { %v856_v44 = vadd.f32 %v829_v7, %v814_v37  ;;  %v857_v45 = vadd.f32 %v834_v10, %v815_v38  ;;  %v858_v46 = vadd.f32 %v839_v25, %v816_v39  ;;  %v860_v47 = vadd.f32 %v849_v40, %v818_v29 }
 0x21d   : > { %v859_v48 = vadd.f32 %v844_v26, %v817_v41  ;;  %v861_v49 = vadd.f32 %v854_v43, %v819_v42 }
 0x21e   : > { %vm862_vm3 = vcmp.gt.f32.partialorder %v856_v44, 0.0  ;;  %vm863_vm4 = vcmp.gt.f32.partialorder %v857_v45, 0.0  ;;  %v868_v50 = vmul.f32 0.1, %v856_v44  ;;  %v869_v51 = vmul.f32 0.1, %v857_v45 }
 0x21f   : > { %vm864_vm5 = vcmp.gt.f32.partialorder %v858_v46, 0.0  ;;  %vm865_vm6 = vcmp.gt.f32.partialorder %v859_v48, 0.0  ;;  %v870_v52 = vmul.f32 0.1, %v858_v46  ;;  %v871_v53 = vmul.f32 0.1, %v859_v48 }
 0x220   : > { %v874_v54 = vsel %vm862_vm3, %v856_v44, %v868_v50  ;;  %v875_v55 = vsel %vm863_vm4, %v857_v45, %v869_v51  ;;  %vm866_vm7 = vcmp.gt.f32.partialorder %v860_v47, 0.0  ;;  %vm867_vm8 = vcmp.gt.f32.partialorder %v861_v49, 0.0 }
 0x221   : > { %v1205_v56 = vpack.c.bf16 %v875_v55, %v874_v54  ;;  %v876_v57 = vsel %vm864_vm5, %v858_v46, %v870_v52  ;;  %v877_v58 = vsel %vm865_vm6, %v859_v48, %v871_v53  ;;  %v872_v59 = vmul.f32 0.1, %v860_v47 }
 0x222   : > { %v1209_v60 = vpack.c.bf16 %v877_v58, %v876_v57  ;;  %v873_v61 = vmul.f32 0.1, %v861_v49 }
 0x223   : > { %1206 = vmatprep.subr.bf16.mxu0 %v1205_v56  ;;  %v878_v62 = vsel %vm866_vm7, %v860_v47, %v872_v59 }
 0x224   : > { %1208 = vmatpush3.bf16.msra.mxu0 %v1205_v56  ;;  %v879_v63 = vsel %vm867_vm8, %v861_v49, %v873_v61 }
 0x225   : > { %1210 = vmatprep.subr.bf16.mxu0 %v1209_v60  ;;  %v1213_v0 = vpack.c.bf16 %v879_v63, %v878_v62 }
 0x228   : > { %1212 = vmatpush3.bf16.msra.mxu0 %v1209_v60 }
 0x229   : > { %1214 = vmatprep.subr.bf16.mxu0 %v1213_v0 }
 0x22c   : > { %1216 = vmatpush3.bf16.msra.mxu0 %v1213_v0 }
 0x22f   : > { %1179 = vmatmul.mubr.msk.f32.vlgmr.msra.gmra.mrb[8].mxu0 %vm894_vm2, %v881_v1 }
 0x302   : > { %v1180_v3 = vpop.f32.mrb[8].mxu0 }
 0x303   : > { %v973_v5 = vadd.f32 %v1180_v3, %v892_v2  ;;  %v967_v6 = vpop.f32.mrb[9].mxu0 }
 0x304   : > { %v968_v7 = vadd.f32 %v967_v6, %v887_v4 }
 0x305   : > { %977 = vst [vmem:[%s376_s17 + $0x8] sm:$0xff] %v973_v5 }
 0x306   : > { %976 = vst [vmem:[%s376_s17] sm:$0xff] %v968_v7 }
 0x307   : > { %1277 = shalt.err (!%p1274_p5)
}
 0x308   : > { %s1278_s16 = scalar_lea.hbm %s1611_s25, 256  ;;  %s1282_s23 = scalar_lea.hbm %s1664_s9, 512 }
 0x309   : > { %p1279_p7 = scmp.ne.s32.totalorder %s1611_s25, %s1278_s16  ;;  %p1283_p12 = scmp.lt.u32.totalorder %s1611_s25, %s1664_s9 }
 0x30a   : > { %p1284_p13 = scmp.lt.u32.totalorder %s1282_s23, %s1278_s16  ;;  %p1286_p1 = scmp.lt.u32.totalorder %s1278_s16, %s1611_s25 }
 0x30b   : > { %p1280_p10 = pnand %p1279_p7, %p1421_p6 }
 0x30c   : > { %p1285_p0 = por %p1284_p13, %p1283_p12 }
 0x30d   : > { %p1281_p11 = pneg %p1280_p10 }
 0x30e   : > { %p1287_p2 = por %p1286_p1, %p1285_p0 }
 0x310   : > { %p1288_p3 = pnand %p1287_p2, %p1281_p11 }
 0x312   : > { %1291 = shalt.err (!%p1288_p3)
}
 0x313   : > { %s1330_s13 = smov 128   ;;  %s1331_s29 = smov 256  }
 0x314   : > { %s1332_s14 = smov 8  }
 0x315   : > { %1217 = dma.vmem_to_hbm [thread:$0]  (%p1421_p6), %s1606_s21, 256, %s1611_s25, %s979_s26, %s1330_s13, %s1331_s29, %s1332_s14  }
 0x316 PF: > { %s1006_s17 = sand.u32 1, %s1314_s30   ;;  %p1220_p4 = pnand %p1061_p9, %p1425_p8 }
 0x317   : > { %s1007_s16 = scalar_lea.sflag [#allocation4], %s1006_s17 }
 0x318   : > { %1309 = dma.done.wait (!%p1220_p4), %s1007_s16, 256  }
 0x319   : > { %1311 = vsyncadd (!%p1220_p4), %s1007_s16, 4294967040  ;;  %p19_p5 = scmp.ge.s32.totalorder %s1406_s15, 4   ;;  %s1667_s30 = smov %s1318_s10 }
 0x31a   : > { %s1668_s10 = smov %s1322_s11  ;;  %s1669_s11 = smov %s1419_s18 }
 0x31b   : > { %s1670_s12 = smov %s1406_s15  ;;  %21 = sbr.rel (!%p19_p5) target bundleno = 3 (0x3), region = 134 }
 0x322   :  { %1012 = vsyncpa [#allocation4], 1 }
 0x323   :  { %1014 = vsyncpa [#allocation4 + $0x1], 1 }

</bundles_post_ra>
